<compile_context>
chip_gen: v7x
topology: tpu7x:2x2x1
jax: 0.10.0
libtpu: 0.0.40
codegen_flags: <defaults>
</compile_context>

<pallas_src>
import jax
import jax.numpy as jnp
import numpy as np
from jax.experimental import pallas as pl
from jax.experimental.pallas import tpu as pltpu

# The 8 fixed 3x3 filters are all "neighbor - center": these are the neighbor
# offsets relative to the center pixel, in the same order as kernel_filter_list.
_NEIGHBOR_OFFSETS = (
    (-1, -1), (-1, 0), (-1, 1),
    (0, -1),           (0, 1),
    (1, -1),  (1, 0),  (1, 1),
)


def _make_kernel(H, W):
    """Per-block kernel for a (b_tile, H*W) lane-dense batch tile."""
    N = H * W
    # nb[k] = d[k + off] with off = di*W + dj  ->  lane-axis roll by (-off) % N
    # (pltpu.roll follows jnp.roll semantics: roll(x, s)[k] = x[k - s]).
    shifts = tuple((-(di * W + dj)) % N for di, dj in _NEIGHBOR_OFFSETS)

    def kernel(out_ref, label_ref, mask_ref, partial_ref):
        # d = out - label, upcast to f32 before arithmetic (v5e VPU has no
        # native bf16; exactness vs the f32 reference is preserved).
        d = out_ref[...].astype(jnp.float32) - label_ref[...].astype(jnp.float32)

        # Accumulate each neighbor term right after its roll so only ~4
        # full-size arrays (d, acc, nb, t) are ever live simultaneously.
        acc = jnp.zeros_like(d)
        for s in shifts:
            nb = pltpu.roll(d, s, 1)          # one lane-axis roll per neighbor
            t = nb - d
            acc = acc + t * t

        # One interior-mask multiply (broadcast (1,N) against (b_tile,N)) and
        # ONE cross-lane reduction per block; mean divide happens in wrapper.
        partial_ref[0, 0] = jnp.sum(acc * mask_ref[...])

    return kernel


def _round_up(x, m):
    return -(-x // m) * m


def _pick_batch_tile(B, N, itemsize):
    """Batch tile sized by input bytes (~2 MiB/input/step), multiple of 8."""
    img_bytes = max(1, N * itemsize)
    target_bytes = 2 << 20                    # ~2 MiB of input per grid step
    bt = max(1, target_bytes // img_bytes)
    # Keep >= 2 grid steps when the batch allows it so v7x's two TensorCores
    # can split the (parallel) grid.
    bt = min(bt, _round_up(max(1, -(-B // 2)), 8))
    # Sublane-friendly tile: multiple of 8 (zero-padded batch rows contribute
    # exactly 0 to the partial sums).
    bt = max(8, bt - bt % 8)
    return bt


def _interior_mask_flat(H, W):
    """(1, H*W) f32 mask of interior centers (rows/cols 1..H-2 / 1..W-2)."""
    m = np.zeros((H, W), np.float32)
    m[1:H - 1, 1:W - 1] = 1.0
    return jnp.asarray(m.reshape(1, H * W))


def contrast_depth_loss(out, label):
    """Pallas implementation of ContrastDepthLoss.forward(out, label)."""
    assert out.shape == label.shape and out.ndim == 3
    B, H, W = out.shape
    assert H >= 3 and W >= 3
    N = H * W

    # Flatten spatial dims: last dim = H*W gives full lane density for the
    # typical small depth maps (e.g. 32x32 -> 1024 lanes) and lets every
    # neighbor shift be a single lane-axis roll.
    out2 = out.reshape(B, N)
    label2 = label.reshape(B, N)

    itemsize = int(jnp.dtype(out.dtype).itemsize)
    b_tile = _pick_batch_tile(B, N, itemsize)

    # Zero-pad the batch up to a tile multiple; padded rows have d = 0 and
    # contribute 0, and `count` below uses the ORIGINAL B.
    B_pad = _round_up(B, b_tile)
    if B_pad != B:
        pad = ((0, B_pad - B), (0, 0))
        out2 = jnp.pad(out2, pad)
        label2 = jnp.pad(label2, pad)
    num_blocks = B_pad // b_tile

    mask = _interior_mask_flat(H, W)

    cost = pl.CostEstimate(
        flops=26 * B_pad * N,
        transcendentals=0,
        bytes_accessed=2 * B_pad * N * itemsize + (4 * N + 4) * num_blocks,
    )

    partials = pl.pallas_call(
        _make_kernel(H, W),
        grid=(num_blocks,),
        out_shape=jax.ShapeDtypeStruct((num_blocks, 1), jnp.float32),
        in_specs=[
            pl.BlockSpec((b_tile, N), lambda b: (b, 0)),
            pl.BlockSpec((b_tile, N), lambda b: (b, 0)),
            pl.BlockSpec((1, N), lambda b: (0, 0)),
        ],
        out_specs=pl.BlockSpec((1, 1), lambda b: (b, 0),
                               memory_space=pltpu.MemorySpace.SMEM),
        compiler_params=pltpu.CompilerParams(
            dimension_semantics=("parallel",),
            vmem_limit_bytes=40 * 1024 * 1024,
        ),
        cost_estimate=cost,
    )(out2, label2, mask)

    # Final reduction over per-block partial sums + the MSE mean divide.
    count = jnp.float32(B * 8 * (H - 2) * (W - 2))
    return jnp.sum(partials) / count


def _reference_loss(out, label):
    """Plain-JAX reference mirroring the grouped conv + MSE exactly."""
    kernels = []
    for di, dj in _NEIGHBOR_OFFSETS:
        k = jnp.zeros((3, 3), jnp.float32)
        k = k.at[1 + di, 1 + dj].set(1.0).at[1, 1].add(-1.0)
        kernels.append(k)

    def contrast(x):  # x: (B, H, W)
        maps = []
        for k in kernels:
            m = jax.lax.conv_general_dilated(
                x[:, None, :, :], k[None, None, :, :],
                window_strides=(1, 1), padding="VALID",
                dimension_numbers=("NCHW", "OIHW", "NCHW"))
            maps.append(m[:, 0])
        return jnp.stack(maps, axis=1)  # (B, 8, H-2, W-2)

    co, cl = contrast(out), contrast(label)
    return jnp.mean((co - cl) ** 2)


if __name__ == "__main__":
    key = jax.random.PRNGKey(0)
    k1, k2 = jax.random.split(key)
    B, H, W = 2, 16, 16
    out = jax.random.uniform(k1, (B, H, W), dtype=jnp.float32)
    label = jax.random.uniform(k2, (B, H, W), dtype=jnp.float32)

    loss = jax.jit(contrast_depth_loss)(out, label)
    jax.block_until_ready(loss)

    ref = _reference_loss(out, label)
    assert jnp.allclose(loss, ref, rtol=1e-4, atol=1e-6), (loss, ref)

    print("KERNEL_OK")
</pallas_src>

<mosaic_0001>
module attributes {stable_mosaic.version = 11 : i64} {
  func.func @kernel(%arg0: i32, %arg1: memref<8x256xf32, #tpu.memory_space<vmem>>, %arg2: memref<8x256xf32, #tpu.memory_space<vmem>>, %arg3: memref<1x256xf32, #tpu.memory_space<vmem>>, %arg4: memref<1x1xf32, #tpu.memory_space<smem>>) attributes {dimension_semantics = [#tpu.dimension_semantics<parallel>], iteration_bounds = array<i64: 1>, scalar_prefetch = 0 : i64, scratch_operands = 0 : i64, tpu.core_type = #tpu.core_type<tc>, window_params = [{transform_indices = @transform_0, window_bounds = array<i64: 8, 256>}, {transform_indices = @transform_1, window_bounds = array<i64: 8, 256>}, {pipeline_mode = #tpu.pipeline_mode<synchronous>, transform_indices = @transform_2, window_bounds = array<i64: 1, 256>}, {transform_indices = @transform_3, window_bounds = array<i64: 1, 1>}]} {
    %c0 = arith.constant 0 : index
    %c0_0 = arith.constant 0 : index
    %0 = vector.load %arg1[%c0, %c0_0] : memref<8x256xf32, #tpu.memory_space<vmem>>, vector<8x256xf32>
    %c0_1 = arith.constant 0 : index
    %c0_2 = arith.constant 0 : index
    %1 = vector.load %arg2[%c0_1, %c0_2] : memref<8x256xf32, #tpu.memory_space<vmem>>, vector<8x256xf32>
    %2 = arith.subf %0, %1 : vector<8x256xf32>
    %cst = arith.constant 0.000000e+00 : f32
    %3 = vector.broadcast %cst : f32 to vector<8x256xf32>
    %c17_i32 = arith.constant 17 : i32
    %4 = tpu.dynamic_rotate %2 by %c17_i32 dim 1 : vector<8x256xf32>, i32 -> vector<8x256xf32>
    %5 = arith.subf %4, %2 : vector<8x256xf32>
    %6 = arith.mulf %5, %5 : vector<8x256xf32>
    %7 = arith.addf %3, %6 : vector<8x256xf32>
    %c16_i32 = arith.constant 16 : i32
    %8 = tpu.dynamic_rotate %2 by %c16_i32 dim 1 : vector<8x256xf32>, i32 -> vector<8x256xf32>
    %9 = arith.subf %8, %2 : vector<8x256xf32>
    %10 = arith.mulf %9, %9 : vector<8x256xf32>
    %11 = arith.addf %7, %10 : vector<8x256xf32>
    %c15_i32 = arith.constant 15 : i32
    %12 = tpu.dynamic_rotate %2 by %c15_i32 dim 1 : vector<8x256xf32>, i32 -> vector<8x256xf32>
    %13 = arith.subf %12, %2 : vector<8x256xf32>
    %14 = arith.mulf %13, %13 : vector<8x256xf32>
    %15 = arith.addf %11, %14 : vector<8x256xf32>
    %c1_i32 = arith.constant 1 : i32
    %16 = tpu.dynamic_rotate %2 by %c1_i32 dim 1 : vector<8x256xf32>, i32 -> vector<8x256xf32>
    %17 = arith.subf %16, %2 : vector<8x256xf32>
    %18 = arith.mulf %17, %17 : vector<8x256xf32>
    %19 = arith.addf %15, %18 : vector<8x256xf32>
    %c255_i32 = arith.constant 255 : i32
    %20 = tpu.dynamic_rotate %2 by %c255_i32 dim 1 : vector<8x256xf32>, i32 -> vector<8x256xf32>
    %21 = arith.subf %20, %2 : vector<8x256xf32>
    %22 = arith.mulf %21, %21 : vector<8x256xf32>
    %23 = arith.addf %19, %22 : vector<8x256xf32>
    %c241_i32 = arith.constant 241 : i32
    %24 = tpu.dynamic_rotate %2 by %c241_i32 dim 1 : vector<8x256xf32>, i32 -> vector<8x256xf32>
    %25 = arith.subf %24, %2 : vector<8x256xf32>
    %26 = arith.mulf %25, %25 : vector<8x256xf32>
    %27 = arith.addf %23, %26 : vector<8x256xf32>
    %c240_i32 = arith.constant 240 : i32
    %28 = tpu.dynamic_rotate %2 by %c240_i32 dim 1 : vector<8x256xf32>, i32 -> vector<8x256xf32>
    %29 = arith.subf %28, %2 : vector<8x256xf32>
    %30 = arith.mulf %29, %29 : vector<8x256xf32>
    %31 = arith.addf %27, %30 : vector<8x256xf32>
    %c239_i32 = arith.constant 239 : i32
    %32 = tpu.dynamic_rotate %2 by %c239_i32 dim 1 : vector<8x256xf32>, i32 -> vector<8x256xf32>
    %33 = arith.subf %32, %2 : vector<8x256xf32>
    %34 = arith.mulf %33, %33 : vector<8x256xf32>
    %35 = arith.addf %31, %34 : vector<8x256xf32>
    %c0_3 = arith.constant 0 : index
    %c0_4 = arith.constant 0 : index
    %36 = vector.load %arg3[%c0_3, %c0_4] : memref<1x256xf32, #tpu.memory_space<vmem>>, vector<1x256xf32>
    %37 = vector.broadcast %36 : vector<1x256xf32> to vector<8x256xf32>
    %38 = arith.mulf %35, %37 : vector<8x256xf32>
    %39 = vector.shape_cast %38 : vector<8x256xf32> to vector<1x8x256xf32>
    %cst_5 = arith.constant dense<0.000000e+00> : vector<1xf32>
    %40 = vector.multi_reduction <add>, %39, %cst_5 [1, 2] : vector<1x8x256xf32> to vector<1xf32>
    %41 = vector.shape_cast %40 : vector<1xf32> to vector<1x1x1xf32>
    %42 = vector.extract %41[0, 0, 0] : f32 from vector<1x1x1xf32>
    %c0_6 = arith.constant 0 : index
    %c0_7 = arith.constant 0 : index
    %43 = memref.load %arg4[%c0_6, %c0_7] : memref<1x1xf32, #tpu.memory_space<smem>>
    memref.store %42, %arg4[%c0_6, %c0_7] : memref<1x1xf32, #tpu.memory_space<smem>>
    return
  }
  func.func @transform_0(%arg0: i32) -> (i32, i32) {
    %c0_i32 = arith.constant 0 : i32
    %c0_i32_0 = arith.constant 0 : i32
    return %arg0, %c0_i32 : i32, i32
  }
  func.func @transform_1(%arg0: i32) -> (i32, i32) {
    %c0_i32 = arith.constant 0 : i32
    %c0_i32_0 = arith.constant 0 : i32
    return %arg0, %c0_i32 : i32, i32
  }
  func.func @transform_2(%arg0: i32) -> (i32, i32) {
    %c0_i32 = arith.constant 0 : i32
    %c0_i32_0 = arith.constant 0 : i32
    %c0_i32_1 = arith.constant 0 : i32
    return %c0_i32, %c0_i32_0 : i32, i32
  }
  func.func @transform_3(%arg0: i32) -> (i32, i32) {
    %c0_i32 = arith.constant 0 : i32
    %c0_i32_0 = arith.constant 0 : i32
    return %arg0, %c0_i32 : i32, i32
  }
}

</mosaic_0001>

<bundles_post_ra>
// kernel: contrast_depth_loss.1
= control target key start
LH: loop header
LB: loop body
LE: loop exit
PB: predicated region body
PF: predicated region fallthrough
CT: control target
= control target key end

     0   :  { %s295_s0 = inlined_call_operand.vmem [shape: f32[8,256], index: 0, kind: input, shape index: {}]   ;;  %s296_s1 = inlined_call_operand.vmem [shape: f32[8,256], index: 1, kind: input, shape index: {}]   ;;  %s297_s2 = inlined_call_operand.vmem [shape: f32[1,256], index: 2, kind: input, shape index: {}]   ;;  %s298_s3 = inlined_call_operand.hbm [shape: f32[1,1], index: 3, kind: output, shape index: {}]  }
   0x1   :  { %v15_v0 = vld [vmem:[%s295_s0] sm:$0xff]  ;;  %v16_v2 = vld [vmem:[%s295_s0 + $0x8] sm:$0xff] }
   0x2   :  { %v17_v1 = vld [vmem:[%s296_s1] sm:$0xff]  ;;  %v18_v4 = vld [vmem:[%s296_s1 + $0x8] sm:$0xff] }
   0x3   :  { %v227_v3 = vsub.f32 %v15_v0, %v17_v1 }
   0x4   :  { %8 = vsyncpa [#allocation3], 0  ;;  %s189_s20 = smov 16   ;;  %s190_s21 = smov 17   ;;  %v234_v5 = vsub.f32 %v16_v2, %v18_v4  ;;  %v25_v6 = vlaneseq }
   0x5   :  { %36 = vrot.lane.b32.xlu1 %v227_v3, %s189_s20  ;;  %21 = vrot.lane.b32.xlu0 %v227_v3, %s190_s21  ;;  %s191_s0 = smov 15   ;;  %s192_s22 = smov 1  }
   0x6   :  { %s193_s1 = smov 127   ;;  %s194_s23 = smov 113   ;;  %v250_v9 = vand.u32 127, %v25_v6  ;;  %v130_v56 = vshrl.u32 %v25_v6, 7 }
   0x7   :  { %s195_s24 = smov 112   ;;  %s196_s25 = smov 111  }
   0x8   :  { %vm40_vm0 = vcmp.lt.s32.totalorder %v250_v9, 16  ;;  %vm27_vm1 = vcmp.lt.s32.totalorder %v250_v9, 17  ;;  %vm53_vm2 = vcmp.lt.s32.totalorder %v250_v9, 15  ;;  %vm66_vm3 = vcmp.lt.s32.totalorder %v250_v9, 1  ;;  %s177_s30 = scalar_lea.hbm %s298_s3, 16 }
   0x9   :  { %38 = vrot.lane.b32.xlu1 %v234_v5, %s189_s20  ;;  %23 = vrot.lane.b32.xlu0 %v234_v5, %s190_s21  ;;  %vm79_vm4 = vcmp.lt.s32.totalorder %v250_v9, 127  ;;  %vm92_vm5 = vcmp.lt.s32.totalorder %v250_v9, 113  ;;  %vm105_vm6 = vcmp.lt.s32.totalorder %v250_v9, 112  ;;  %vm118_vm7 = vcmp.lt.s32.totalorder %v250_v9, 111  ;;  %p178_p0 = scmp.ne.s32.totalorder %s298_s3, %s177_s30  ;;  %p181_p1 = scmp.lt.u32.totalorder %s177_s30, %s298_s3 }
   0xb   :  { %p183_p2 = pnand %p181_p1, %p178_p0 }
   0xd   :  { %51 = vrot.lane.b32.xlu1 %v234_v5, %s191_s0  ;;  %49 = vrot.lane.b32.xlu0 %v227_v3, %s191_s0 }
  0x11   :  { %64 = vrot.lane.b32.xlu1 %v234_v5, %s192_s22  ;;  %62 = vrot.lane.b32.xlu0 %v227_v3, %s192_s22 }
  0x15   :  { %77 = vrot.lane.b32.xlu1 %v234_v5, %s193_s1  ;;  %75 = vrot.lane.b32.xlu0 %v227_v3, %s193_s1 }
  0x19   :  { %90 = vrot.lane.b32.xlu1 %v234_v5, %s194_s23  ;;  %88 = vrot.lane.b32.xlu0 %v227_v3, %s194_s23 }
  0x1d   :  { %103 = vrot.lane.b32.xlu1 %v234_v5, %s195_s24  ;;  %101 = vrot.lane.b32.xlu0 %v227_v3, %s195_s24 }
  0x21   :  { %116 = vrot.lane.b32.xlu1 %v234_v5, %s196_s25  ;;  %114 = vrot.lane.b32.xlu0 %v227_v3, %s196_s25 }
  0x77   :  { %v37_v7 = vpop.permute.xlu1 %36  ;;  %v22_v8 = vpop.permute.xlu0 %21 }
  0x7b   :  { %v39_v10 = vpop.permute.xlu1 %38  ;;  %v24_v11 = vpop.permute.xlu0 %23 }
  0x7c   :  { %v41_v12 = vsel %vm40_vm0, %v37_v7, %v39_v10  ;;  %v42_v13 = vsel %vm40_vm0, %v39_v10, %v37_v7  ;;  %v28_v16 = vsel %vm27_vm1, %v22_v8, %v24_v11  ;;  %v29_v17 = vsel %vm27_vm1, %v24_v11, %v22_v8 }
  0x7d   :  { %v43_v18 = vsub.f32 %v42_v13, %v227_v3  ;;  %v44_v19 = vsub.f32 %v41_v12, %v234_v5  ;;  %v30_v20 = vsub.f32 %v29_v17, %v227_v3  ;;  %v31_v21 = vsub.f32 %v28_v16, %v234_v5  ;;  %v127_v16 = vld [vmem:[%s297_s2] sm:$0x3] }
  0x7e   :  { %v131_v8 = vsub.s32 0, %v130_v56  ;;  %v135_v10 = vsub.s32 1, %v130_v56 }
  0x7f   :  { %v52_v14 = vpop.permute.xlu1 %51  ;;  %v50_v15 = vpop.permute.xlu0 %49  ;;  %v45_v30 = vmul.f32 %v43_v18, %v43_v18  ;;  %v46_v31 = vmul.f32 %v44_v19, %v44_v19  ;;  %v32_v32 = vmul.f32 %v30_v20, %v30_v20  ;;  %v33_v33 = vmul.f32 %v31_v21, %v31_v21 }
  0x80   :  { %v54_v22 = vsel %vm53_vm2, %v50_v15, %v52_v14  ;;  %v55_v23 = vsel %vm53_vm2, %v52_v14, %v50_v15 }
  0x81   :  { %v56_v28 = vsub.f32 %v55_v23, %v227_v3  ;;  %v57_v29 = vsub.f32 %v54_v22, %v234_v5  ;;  %v47_v42 = vadd.f32 %v45_v30, %v32_v32  ;;  %v48_v43 = vadd.f32 %v46_v31, %v33_v33 }
  0x82   :  { %v132_v23 = vrot.slane %v127_v16, %v131_v8 }
  0x83   :  { %v65_v24 = vpop.permute.xlu1 %64  ;;  %v63_v25 = vpop.permute.xlu0 %62  ;;  %v58_v40 = vmul.f32 %v56_v28, %v56_v28  ;;  %v59_v41 = vmul.f32 %v57_v29, %v57_v29 }
  0x84   :  { %v67_v26 = vsel %vm66_vm3, %v63_v25, %v65_v24  ;;  %v68_v27 = vsel %vm66_vm3, %v65_v24, %v63_v25  ;;  %v136_v24 = vrot.slane %v127_v16, %v135_v10 }
  0x85   :  { %v69_v36 = vsub.f32 %v68_v27, %v227_v3  ;;  %v70_v37 = vsub.f32 %v67_v26, %v234_v5  ;;  %v60_v54 = vadd.f32 %v58_v40, %v47_v42  ;;  %v61_v55 = vadd.f32 %v59_v41, %v48_v43 }
  0x87   :  { %v78_v34 = vpop.permute.xlu1 %77  ;;  %v76_v35 = vpop.permute.xlu0 %75  ;;  %v71_v48 = vmul.f32 %v69_v36, %v69_v36  ;;  %v72_v49 = vmul.f32 %v70_v37, %v70_v37 }
  0x88   :  { %v80_v38 = vsel %vm79_vm4, %v76_v35, %v78_v34  ;;  %v81_v39 = vsel %vm79_vm4, %v78_v34, %v76_v35 }
  0x89   :  { %v82_v44 = vsub.f32 %v80_v38, %v227_v3  ;;  %v83_v45 = vsub.f32 %v81_v39, %v234_v5  ;;  %v73_v61 = vadd.f32 %v71_v48, %v60_v54  ;;  %v74_v62 = vadd.f32 %v72_v49, %v61_v55 }
  0x8b   :  { %v91_v46 = vpop.permute.xlu1 %90  ;;  %v89_v47 = vpop.permute.xlu0 %88  ;;  %v84_v57 = vmul.f32 %v82_v44, %v82_v44  ;;  %v85_v58 = vmul.f32 %v83_v45, %v83_v45 }
  0x8c   :  { %v93_v50 = vsel %vm92_vm5, %v89_v47, %v91_v46  ;;  %v94_v51 = vsel %vm92_vm5, %v91_v46, %v89_v47 }
  0x8d   :  { %v95_v52 = vsub.f32 %v93_v50, %v227_v3  ;;  %v96_v53 = vsub.f32 %v94_v51, %v234_v5  ;;  %v86_v11 = vadd.f32 %v84_v57, %v73_v61  ;;  %v87_v6 = vadd.f32 %v85_v58, %v74_v62 }
  0x8f   :  { %v104_v59 = vpop.permute.xlu1 %103  ;;  %v102_v60 = vpop.permute.xlu0 %101  ;;  %v97_v1 = vmul.f32 %v95_v52, %v95_v52  ;;  %v98_v2 = vmul.f32 %v96_v53, %v96_v53 }
  0x90   :  { %v106_v63 = vsel %vm105_vm6, %v102_v60, %v104_v59  ;;  %v107_v0 = vsel %vm105_vm6, %v104_v59, %v102_v60 }
  0x91   :  { %v108_v4 = vsub.f32 %v106_v63, %v227_v3  ;;  %v109_v7 = vsub.f32 %v107_v0, %v234_v5  ;;  %v99_v19 = vadd.f32 %v97_v1, %v86_v11  ;;  %v100_v20 = vadd.f32 %v98_v2, %v87_v6 }
  0x93   :  { %v110_v12 = vmul.f32 %v108_v4, %v108_v4  ;;  %v111_v13 = vmul.f32 %v109_v7, %v109_v7  ;;  %v117_v14 = vpop.permute.xlu1 %116  ;;  %v115_v15 = vpop.permute.xlu0 %114 }
  0x94   :  { %v119_v17 = vsel %vm118_vm7, %v115_v15, %v117_v14  ;;  %v120_v18 = vsel %vm118_vm7, %v117_v14, %v115_v15 }
  0x95   :  { %v121_v21 = vsub.f32 %v119_v17, %v227_v3  ;;  %v122_v22 = vsub.f32 %v120_v18, %v234_v5  ;;  %v112_v25 = vadd.f32 %v110_v12, %v99_v19  ;;  %v113_v26 = vadd.f32 %v111_v13, %v100_v20 }
  0x97   :  { %v123_v27 = vmul.f32 %v121_v21, %v121_v21  ;;  %v124_v28 = vmul.f32 %v122_v22, %v122_v22 }
  0x99   :  { %v125_v29 = vadd.f32 %v123_v27, %v112_v25  ;;  %v126_v30 = vadd.f32 %v124_v28, %v113_v26 }
  0x9b   :  { %v139_v31 = vmul.f32 %v132_v23, %v125_v29  ;;  %v140_v32 = vmul.f32 %v136_v24, %v126_v30 }
  0x9d   :  { %v141_v33 = vadd.f32 %v140_v32, %v139_v31 }
  0x9f   :  { %142 = vadd.xlane.f32.xlu0 %v141_v33 }
 0x12c   :  { %v143_v9 = vpop.xlane.xlu0 %142 }
 0x12d   :  { %v144_v34 = vrot.slane %v143_v9, 4 }
 0x12f   :  { %v145_v35 = vadd.f32 %v144_v34, %v143_v9 }
 0x131   :  { %v146_v36 = vrot.slane %v145_v35, 2 }
 0x133   :  { %v147_v37 = vadd.f32 %v146_v36, %v145_v35 }
 0x135   :  { %v148_v3 = vrot.slane %v147_v37, 1 }
 0x137   :  { %v149_v38 = vadd.f32 %v148_v3, %v147_v37 }
 0x139   :  { %166 = vpush %v149_v38 }
 0x16a   :  { %s167_s2 = spop %166 }
 0x16b   :  { %152 = sst [smem:[#allocation2]] %s167_s2 }
 0x16c   :  { %186 = shalt.err (!%p183_p2)
}
 0x16d   :  { %s197_s8 = smov [#allocation2]  }
 0x16e   :  { %160 = dma.smem_to_hbm %s197_s8, 16, %s298_s3, [#allocation3]  }
 0x16f   :  { %187 = dma.done.wait [#allocation3], 16  }
 0x170   :  { %188 = vsyncadd [#allocation3], 4294967280 }
 0x171   :  { %164 = sfence }
 0x172   :  { %165 = vsyncpa [#allocation3], 1 }

</bundles_post_ra>
